<compile_context>
chip_gen: v6e
topology: v6e:2x2x1
jax: 0.10.0
libtpu: 0.0.40
codegen_flags: <defaults>
</compile_context>

<pallas_src>
import jax
import jax.numpy as jnp
from jax.experimental import pallas as pl
from jax.experimental.pallas import tpu as pltpu


def _round_up(x, m):
    return ((x + m - 1) // m) * m


def _sublane(itemsize):
    # dtype-native sublane tile: 8 rows for 4-byte dtypes, 16 for 2-byte (bf16).
    return 16 if itemsize == 2 else 8


def _pick_bt(B, bytes_per_batch_row, sublane):
    """Batch tile from a per-operand VMEM slab budget.

    Budget of ~6 MiB per double-buffered operand keeps the kernel comfortably
    inside v5e's 16 MiB default scoped VMEM and v7x's 64 MiB physical VMEM.
    """
    budget = 6 * 1024 * 1024
    cap = (budget // 2) // max(bytes_per_batch_row, 1)
    cap = max(sublane, (cap // sublane) * sublane)
    cap = min(cap, 512)
    if B > cap:
        return cap
    if B > 2 * sublane:
        # >=2 grid steps so the "parallel" batch axis can feed both TCs on v7x.
        return _round_up(pl.cdiv(B, 2), sublane)
    return B


def _clamp_vmem_limit(est_bytes):
    # Explicit scoped-VMEM limit with headroom; never above 40 MiB (v7x-safe).
    return int(min(max(2 * est_bytes, 16 << 20), 40 << 20))


# ---------------------------------------------------------------------------
# Kernel bodies
# ---------------------------------------------------------------------------
def _linear_head_kernel(cls_ref, w_ref, b_ref, pred_ref):
    # cls_ref: [Bt, H] (native dtype), w_ref: [C, H] (native dtype), b_ref: [1, C] f32.
    # Dropout(p=0.5) is identity at inference time (eval mode).
    # TODO(synk): training-mode dropout would need pltpu.prng_seed/prng_random_bits masking.
    acc = jax.lax.dot_general(
        cls_ref[...], w_ref[...],
        (((1,), (1,)), ((), ())),                     # contract over H: [Bt,H] x [C,H] -> [Bt,C]
        preferred_element_type=jnp.float32)           # MXU f32 accumulate, no operand up-cast
    pred_ref[...] = acc + b_ref[...]                  # f32 logits


def _make_einsum_head_kernel(num_classes):
    def kernel(cls_ref, lab_ref, pred_ref):
        # cls_ref: [Bt, H], lab_ref: [Bt, C, H]; pred_ref: [Bt, C] f32.
        cls_f = cls_ref[...].astype(jnp.float32)      # single hoisted cast, [Bt, H]
        acc = jnp.zeros(pred_ref.shape, jnp.float32)
        lane = jax.lax.broadcasted_iota(jnp.int32, pred_ref.shape, 1)
        # Small static C: per-class [Bt, H] multiply + lane reduce keeps peak live
        # vector data at O(Bt*H) instead of materializing a (Bt, C, H) f32 broadcast.
        for c in range(num_classes):
            col = jnp.sum(cls_f * lab_ref[:, c, :].astype(jnp.float32),
                          axis=-1, keepdims=True)     # [Bt, 1]
            acc = jnp.where(lane == c, col, acc)
        pred_ref[...] = acc
    return kernel


# ---------------------------------------------------------------------------
# Python wrapper mirroring Transformer.forward (head only; base_model external)
# ---------------------------------------------------------------------------
def transformer_head_forward(hiddens, w, b, num_classes, method):
    """hiddens: [B, S, H] last_hidden_state of the (external) base model.
    w: [C, H] (PyTorch nn.Linear layout), b: [C]."""
    B, S, H = hiddens.shape
    C = num_classes
    dtype = hiddens.dtype
    itemsize = jnp.dtype(dtype).itemsize
    sublane = _sublane(itemsize)

    # Row-0 slice done once in the wrapper (single strided XLA slice); it is both
    # the returned cls_feats and the kernel input, so nothing is re-read / re-written.
    cls_feats = hiddens[:, 0, :]                      # [B, H]

    Hp = _round_up(H, 128)
    Cp = _round_up(C, 128)

    if method in ("ce", "scl"):
        Bt = _pick_bt(B, H * itemsize, sublane)
        grid = (pl.cdiv(B, Bt),)
        Btp = _round_up(Bt, sublane)

        w_in = w.astype(dtype)                        # MXU takes native operands (bf16 OK)
        b_in = b.astype(jnp.float32).reshape(1, C)

        est = (2 * Btp * Hp * itemsize                        # cls slab (double-buffered)
               + 2 * (_round_up(C, sublane) * Hp * itemsize   # weight (VMEM-resident)
                      + Cp * 4)                               # bias
               + 2 * Btp * Cp * 4                             # predicts out
               + 2 * Btp * Hp * 4)                            # compute headroom
        cparams = pltpu.CompilerParams(
            dimension_semantics=("parallel",),
            vmem_limit_bytes=_clamp_vmem_limit(est))

        predicts = pl.pallas_call(
            _linear_head_kernel,
            grid=grid,
            in_specs=[
                pl.BlockSpec((Bt, H), lambda i: (i, 0)),
                pl.BlockSpec((C, H), lambda i: (0, 0)),   # weight stays VMEM-resident
                pl.BlockSpec((1, C), lambda i: (0, 0)),   # bias stays VMEM-resident
            ],
            out_specs=pl.BlockSpec((Bt, C), lambda i: (i, 0)),
            out_shape=jax.ShapeDtypeStruct((B, C), jnp.float32),
            compiler_params=cparams,
        )(cls_feats, w_in, b_in)
        label_feats = None
    else:
        # Label rows sliced once in the wrapper and returned as-is; the kernel only
        # produces the logits, so there is no duplicated cls/label writeback.
        label_feats = hiddens[:, 1:C + 1, :]          # [B, C, H]

        Bt = _pick_bt(B, (C + 1) * H * itemsize, sublane)
        grid = (pl.cdiv(B, Bt),)
        Btp = _round_up(Bt, sublane)
        Cs = _round_up(C, sublane)

        est = (2 * Btp * Hp * itemsize                # cls slab (double-buffered)
               + 2 * Btp * Cs * Hp * itemsize         # label slab (double-buffered)
               + 2 * Btp * Cp * 4                     # predicts out
               + 3 * Btp * Hp * 4)                    # f32 per-class intermediates
        cparams = pltpu.CompilerParams(
            dimension_semantics=("parallel",),
            vmem_limit_bytes=_clamp_vmem_limit(est))

        predicts = pl.pallas_call(
            _make_einsum_head_kernel(C),
            grid=grid,
            in_specs=[
                pl.BlockSpec((Bt, H), lambda i: (i, 0)),
                pl.BlockSpec((Bt, C, H), lambda i: (i, 0, 0)),
            ],
            out_specs=pl.BlockSpec((Bt, C), lambda i: (i, 0)),
            out_shape=jax.ShapeDtypeStruct((B, C), jnp.float32),
            compiler_params=cparams,
        )(cls_feats, label_feats)

    return {"predicts": predicts, "cls_feats": cls_feats, "label_feats": label_feats}


if __name__ == "__main__":
    # Small shapes consistent with the module: batch=2, seq=8, hidden=32, classes=4.
    B, S, H, C = 2, 8, 32, 4

    key = jax.random.PRNGKey(0)
    k_hid, k_w, k_b = jax.random.split(key, 3)

    # Simulated base_model(**inputs).last_hidden_state
    hiddens = jax.random.normal(k_hid, (B, S, H), dtype=jnp.float32)

    # nn.Linear(hidden_size, num_classes) parameters in PyTorch layout.
    bound = 1.0 / (H ** 0.5)
    w = jax.random.uniform(k_w, (C, H), minval=-bound, maxval=bound, dtype=jnp.float32)
    b = jax.random.uniform(k_b, (C,), minval=-bound, maxval=bound, dtype=jnp.float32)

    # --- method = 'ce' branch (linear head) ---
    out_ce = transformer_head_forward(hiddens, w, b, C, method="ce")
    jax.block_until_ready(out_ce["predicts"])
    ref_cls = hiddens[:, 0, :]
    ref_ce = ref_cls @ w.T + b[None, :]
    assert jnp.allclose(out_ce["predicts"], ref_ce, atol=1e-5), "linear head mismatch"
    assert jnp.allclose(out_ce["cls_feats"], ref_cls, atol=1e-6), "cls_feats mismatch (ce)"
    assert out_ce["label_feats"] is None

    # --- method = other (e.g. 'dualcl') branch (einsum head) ---
    out_dc = transformer_head_forward(hiddens, w, b, C, method="dualcl")
    jax.block_until_ready(out_dc["predicts"])
    ref_lab = hiddens[:, 1:C + 1, :]
    ref_dc = jnp.einsum("bd,bcd->bc", ref_cls, ref_lab)
    assert jnp.allclose(out_dc["predicts"], ref_dc, atol=1e-5), "einsum head mismatch"
    assert jnp.allclose(out_dc["cls_feats"], ref_cls, atol=1e-6), "cls_feats mismatch (dualcl)"
    assert jnp.allclose(out_dc["label_feats"], ref_lab, atol=1e-6), "label_feats mismatch"

    print("KERNEL_OK")
</pallas_src>

<mosaic_0001>
module attributes {stable_mosaic.version = 11 : i64} {
  func.func @_linear_head_kernel(%arg0: i32, %arg1: memref<2x32xf32, #tpu.memory_space<vmem>>, %arg2: memref<4x32xf32, #tpu.memory_space<vmem>>, %arg3: memref<1x4xf32, #tpu.memory_space<vmem>>, %arg4: memref<2x4xf32, #tpu.memory_space<vmem>>) attributes {dimension_semantics = [#tpu.dimension_semantics<parallel>], iteration_bounds = array<i64: 1>, scalar_prefetch = 0 : i64, scratch_operands = 0 : i64, tpu.core_type = #tpu.core_type<tc>, window_params = [{transform_indices = @transform_0, window_bounds = array<i64: 2, 32>}, {pipeline_mode = #tpu.pipeline_mode<synchronous>, transform_indices = @transform_1, window_bounds = array<i64: 4, 32>}, {pipeline_mode = #tpu.pipeline_mode<synchronous>, transform_indices = @transform_2, window_bounds = array<i64: 1, 4>}, {transform_indices = @transform_3, window_bounds = array<i64: 2, 4>}]} {
    %c0 = arith.constant 0 : index
    %c0_0 = arith.constant 0 : index
    %0 = vector.load %arg1[%c0, %c0_0] : memref<2x32xf32, #tpu.memory_space<vmem>>, vector<2x32xf32>
    %c0_1 = arith.constant 0 : index
    %c0_2 = arith.constant 0 : index
    %1 = vector.load %arg2[%c0_1, %c0_2] : memref<4x32xf32, #tpu.memory_space<vmem>>, vector<4x32xf32>
    %cst = arith.constant dense<0.000000e+00> : vector<2x4xf32>
    %2 = tpu.matmul %0, %1, %cst {dimension_numbers = #tpu.dot_dimension_numbers<[1], [1], [0], [0], [0, 0, 1, 0], [], []>} : vector<2x32xf32>, vector<4x32xf32>, vector<2x4xf32> -> vector<2x4xf32>
    %c0_3 = arith.constant 0 : index
    %c0_4 = arith.constant 0 : index
    %3 = vector.load %arg3[%c0_3, %c0_4] : memref<1x4xf32, #tpu.memory_space<vmem>>, vector<1x4xf32>
    %4 = vector.broadcast %3 : vector<1x4xf32> to vector<2x4xf32>
    %5 = arith.addf %2, %4 : vector<2x4xf32>
    %c0_5 = arith.constant 0 : index
    %c0_6 = arith.constant 0 : index
    %6 = vector.load %arg4[%c0_5, %c0_6] : memref<2x4xf32, #tpu.memory_space<vmem>>, vector<2x4xf32>
    tpu.vector_store %arg4[%c0_5, %c0_6], %5 {strides = array<i32>} : memref<2x4xf32, #tpu.memory_space<vmem>>, vector<2x4xf32>,
    return
  }
  func.func @transform_0(%arg0: i32) -> (i32, i32) {
    %c0_i32 = arith.constant 0 : i32
    %c0_i32_0 = arith.constant 0 : i32
    return %arg0, %c0_i32 : i32, i32
  }
  func.func @transform_1(%arg0: i32) -> (i32, i32) {
    %c0_i32 = arith.constant 0 : i32
    %c0_i32_0 = arith.constant 0 : i32
    %c0_i32_1 = arith.constant 0 : i32
    return %c0_i32, %c0_i32_0 : i32, i32
  }
  func.func @transform_2(%arg0: i32) -> (i32, i32) {
    %c0_i32 = arith.constant 0 : i32
    %c0_i32_0 = arith.constant 0 : i32
    %c0_i32_1 = arith.constant 0 : i32
    return %c0_i32, %c0_i32_0 : i32, i32
  }
  func.func @transform_3(%arg0: i32) -> (i32, i32) {
    %c0_i32 = arith.constant 0 : i32
    %c0_i32_0 = arith.constant 0 : i32
    return %arg0, %c0_i32 : i32, i32
  }
}

</mosaic_0001>

<bundles_post_ra>
// kernel: tpu_custom_call.1
= control target key start
LH: loop header
LB: loop body
LE: loop exit
PB: predicated region body
PF: predicated region fallthrough
CT: control target
= control target key end

     0   :  { %8 = vsyncpa [#allocation3], 0  ;;  %s261_s0 = inlined_call_operand.hbm [shape: f32[2,32], index: 0, kind: input, shape index: {}]   ;;  %s262_s1 = inlined_call_operand.hbm [shape: f32[4,32], index: 1, kind: input, shape index: {}]   ;;  %s263_s2 = inlined_call_operand.vmem [shape: f32[1,4], index: 2, kind: input, shape index: {}]   ;;  %s264_s3 = inlined_call_operand.hbm [shape: f32[2,4], index: 3, kind: output, shape index: {}]  }
   0x1   :  { %9 = vsyncpa [#allocation6], 0 }
   0x2   :  { %10 = vsyncpa [#allocation4], 0  ;;  %s224_s12 = smov [#allocation2]   ;;  %s225_s14 = smov [#allocation5]  }
   0x3   :  { %s17_s13 = sshll.u32 %s224_s12, 4  ;;  %s27_s15 = sshll.u32 %s225_s14, 4  ;;  %s18_s13 = int_to_ptr.vmem [resolvable:$true] %s17_s13  ;;  %s28_s15 = int_to_ptr.vmem [resolvable:$true] %s27_s15 }
   0x4   :  { %s166_s16 = scalar_lea.vmem %s18_s13, 32  ;;  %p171_p1 = scmp.lt.s32.totalorder %s18_s13, %s18_s13 }
   0x5   :  { %p167_p0 = scmp.ne.s32.totalorder %s18_s13, %s166_s16  ;;  %p172_p2 = scmp.lt.s32.totalorder %s166_s16, %s166_s16 }
   0x7   :  { %p173_p3 = por %p172_p2, %p171_p1 }
   0x9   :  { %p174_p4 = pnand %p173_p3, %p167_p0 }
   0xb   :  { %177 = shalt.err (!%p174_p4)
}
   0xc   :  { %20 = dma.hbm_to_vmem [thread:$0]  %s261_s0, 32, %s18_s13, [#allocation3]  }
   0xd   :  { %s186_s19 = scalar_lea.vmem %s28_s15, 64  ;;  %p191_p6 = scmp.lt.s32.totalorder %s28_s15, %s28_s15 }
   0xe   :  { %p187_p5 = scmp.ne.s32.totalorder %s28_s15, %s186_s19  ;;  %p192_p7 = scmp.lt.s32.totalorder %s186_s19, %s186_s19 }
  0x10   :  { %p193_p8 = por %p192_p7, %p191_p6 }
  0x12   :  { %p194_p9 = pnand %p193_p8, %p187_p5 }
  0x14   :  { %197 = shalt.err (!%p194_p9)
}
  0x15   :  { %30 = dma.hbm_to_vmem [thread:$0]  %s262_s1, 64, %s28_s15, [#allocation6]  }
  0x16   :  { %218 = dma.done.wait [#allocation3], 32  }
  0x17   :  { %219 = vsyncadd [#allocation3], 4294967264 }
  0x18   :  { %220 = dma.done.wait [#allocation6], 64  }
  0x19   :  { %221 = vsyncadd [#allocation6], 4294967232  ;;  %v226_v0 = vmov 0.0   ;;  %vm227_vm0 = vmmov 0   ;;  %vm48_vm1 = vcmask 261120   ;;  %s228_s23 = smov [#allocation7]  }
  0x1a   :  { %148 = vmatprep.subr.mxu0 %v226_v0  ;;  %150 = vmatprep.mubr.msk.f32.mxu0 %vm227_vm0, %v226_v0  ;;  %v40_v1 = vld [vmem:[#allocation5] sm:$0xf]  ;;  %v39_v2 = vld [vmem:[#allocation2] sm:$0x3]  ;;  %s133_s24 = sshll.u32 %s228_s23, 4  ;;  %vm125_vm2 = vcmask 25600   ;;  %s134_s24 = int_to_ptr.vmem [resolvable:$true] %s133_s24 }
  0x1b   :  { %149 = vmatpush3.xpose.msk.msra.mxu0 %vm48_vm1, %v40_v1  ;;  %v143_v3 = vld [vmem:[%s263_s2] ss:$0 sm:$0xff]  ;;  %s198_s1 = scalar_lea.vmem %s134_s24, 32  ;;  %p203_p11 = scmp.lt.s32.totalorder %s134_s24, %s134_s24 }
  0x1c   :  { %p199_p10 = scmp.ne.s32.totalorder %s134_s24, %s198_s1  ;;  %p204_p12 = scmp.lt.s32.totalorder %s198_s1, %s198_s1 }
  0x1e   :  { %151 = vmatmul.mubr.msk.f32.vlgmr.msra.gmra.mxu0 %vm48_vm1, %v39_v2  ;;  %p205_p13 = por %p204_p12, %p203_p11 }
  0x20   :  { %p206_p0 = pnand %p205_p13, %p199_p10 }
  0xde   :  { %v121_v4 = vpop.f32.mrf.mxu0 }
  0xdf   :  { %v122_v5 = vadd.f32 %v143_v3, %v121_v4 }
  0xe0   :  { %v152_v6 = vpop.f32.mrf.mxu0 }
  0xe1   :  { %126 = vst.msk [vmem:[#allocation7] sm:$0x3] %vm125_vm2, %v122_v5 }
  0xe2   :  { %209 = shalt.err (!%p206_p0)
}
  0xe3   :  { %136 = dma.vmem_to_hbm [thread:$0]  %s134_s24, 32, %s264_s3, [#allocation4]  }
  0xe4   :  { %222 = dma.done.wait [#allocation4], 32  }
  0xe5   :  { %223 = vsyncadd [#allocation4], 4294967264 }
  0xe6   :  { %140 = vsyncpa [#allocation3], 1 }
  0xe7   :  { %141 = vsyncpa [#allocation6], 1 }
  0xe8   :  { %142 = vsyncpa [#allocation4], 1 }

</bundles_post_ra>
